<compile_context>
chip_gen: v5e
topology: v5e:2x2
jax: 0.10.0
libtpu: 0.0.40
codegen_flags: <defaults>
</compile_context>

<pallas_src>
import math
import numpy as np
import jax
import jax.numpy as jnp
from jax.experimental import pallas as pl
from jax.experimental.pallas import tpu as pltpu

# ---- module hyper-parameters (small, consistent with the module's __init__) ----
B = 1                       # Rotary.forward requires batch == 1
S = 8                       # seq length
N_Q = 4                     # n_q_heads
N_KV = 2                    # n_kv_heads  (GQA enabled since N_Q != N_KV)
HD = 32                     # head_dims
HIDDEN = N_Q * HD           # 128 = hidden_dims
KW = N_KV * HD              # 64  = k/v projection width
GROUP = N_Q // N_KV         # q heads per kv head
ROPE_BASE = 10000.0         # rotary_inv_freq_base
EPS = float(np.finfo(np.float32).eps)   # F.rms_norm default eps for float32
SCALE = 1.0 / math.sqrt(HD)             # flex_attention default softmax scale


def _rms_rope(flat, cos, sin_signed, same_head_b, swap_b):
    """Per-head RMS-norm + rotary applied to the full (S, n_heads*HD) tensor at once.

    Per-head sum-of-squares and the rotate-half permutation are tiny constant bf16 matmuls
    (idle MXU) instead of per-head lane slicing / concatenation (XLU).  Only the dot inputs
    are bf16; rsqrt / multiplies stay in f32.
    """
    sq = (flat * flat).astype(jnp.bfloat16)
    ssq = jnp.dot(sq, same_head_b, preferred_element_type=jnp.float32)    # per-head ssq, lane-broadcast
    h = flat * jax.lax.rsqrt(ssq * (1.0 / HD) + EPS)                      # F.rms_norm (no learned weight)
    h_swapped = jnp.dot(h.astype(jnp.bfloat16), swap_b,
                        preferred_element_type=jnp.float32)               # per-head [h2, h1]
    return h * cos + h_swapped * sin_signed                               # rotary (module's convention)


def flex_self_attention_kernel(x_ref, pos_ref, wq_ref, wk_ref, wv_ref, wo_ref,
                               inv_freq_ref, sign_ref,
                               same_q_ref, swap_q_ref, same_k_ref, swap_k_ref,
                               o_ref):
    # TODO(synk): flex_attention's block_mask (BlockMask) sparsity is not implemented;
    #             this is the block_mask=None dense-attention path only.
    x = x_ref[0]                                           # (S, HIDDEN) f32
    xb = x.astype(jnp.bfloat16)

    # ---- projections: bf16 MXU operands, f32 accumulation ----
    q_flat = jnp.dot(xb, wq_ref[...], preferred_element_type=jnp.float32)   # (S, HIDDEN)
    k_flat = jnp.dot(xb, wk_ref[...], preferred_element_type=jnp.float32)   # (S, KW)
    v_flat = jnp.dot(xb, wv_ref[...], preferred_element_type=jnp.float32)   # (S, KW)

    # ---- rotary angles from integer positions (EUP); constants precomputed host-side ----
    pos = pos_ref[...].astype(jnp.float32)                 # (S, 1)
    ang = pos * inv_freq_ref[...]                          # (S, HIDDEN)
    cos = jnp.cos(ang)
    sin_signed = jnp.sin(ang) * sign_ref[...]              # per head: [sin, -sin]
    cos_q = cos * SCALE                                    # fold attention scale into q's rotary
    sin_q = sin_signed * SCALE                             # (rides existing multiplies, off score chain)

    # ---- per-head RMS-norm + rotary, batched across heads (k reuses the HD-periodic prefixes) ----
    q = _rms_rope(q_flat, cos_q, sin_q, same_q_ref[...], swap_q_ref[...])              # pre-scaled q
    k = _rms_rope(k_flat, cos[:, :KW], sin_signed[:, :KW], same_k_ref[...], swap_k_ref[...])

    # ---- GQA attention: per kv head, one QK^T / softmax / PV (group q heads stacked on sublanes) ----
    dn = (((1,), (1,)), ((), ()))                          # contract head_dim with head_dim (no transpose)
    vb = v_flat.astype(jnp.bfloat16)
    pv_heads = []
    for g in range(N_KV):
        kg = k[:, g * HD:(g + 1) * HD].astype(jnp.bfloat16)                            # (S, HD)
        qg = jnp.concatenate(
            [q[:, (g * GROUP + j) * HD:(g * GROUP + j + 1) * HD] for j in range(GROUP)],
            axis=0).astype(jnp.bfloat16)                                               # (GROUP*S, HD)
        s_g = jax.lax.dot_general(qg, kg, dn, preferred_element_type=jnp.float32)      # (GROUP*S, S)
        # No max-subtraction: q, k are per-head RMS-normalized (||.||_2 = sqrt(HD)) and rotary is an
        # isometry, so |score| <= SCALE * HD = sqrt(HD) ~= 5.66 -> exp cannot overflow.
        e = jnp.exp(s_g)
        p = e * pl.reciprocal(jnp.sum(e, axis=-1, keepdims=True), approx=True)         # EUP recip, no VALU div
        pv = jnp.dot(p.astype(jnp.bfloat16), vb[:, g * HD:(g + 1) * HD],
                     preferred_element_type=jnp.float32)                               # (GROUP*S, HD)
        for j in range(GROUP):
            pv_heads.append(pv[j * S:(j + 1) * S])                                     # head h = g*GROUP + j

    # ---- single K=128 out-projection (replaces 4 serial K=32 matmul+add steps) ----
    pv_all = jnp.concatenate(pv_heads, axis=-1).astype(jnp.bfloat16)                   # (S, HIDDEN), heads on lanes
    out = jnp.dot(pv_all, wo_ref[...], preferred_element_type=jnp.float32)             # (S, HIDDEN)
    o_ref[0] = out.astype(o_ref.dtype)                                                 # lane-dense full-width store


def prepare_weights(wq, wk, wv, wo):
    """One-time preparation (hoisted out of the per-call path):
       * transpose PyTorch (out, in) weights to (in, out) and cast to bf16 (MXU-native, half the DMA),
       * build the rotary constants (full-width inv_freq, +/- sign mask) in f32,
       * build the per-head sum-of-squares indicator and rotate-half permutation matrices in bf16."""
    wq_t = jnp.asarray(wq.T, jnp.bfloat16)
    wk_t = jnp.asarray(wk.T, jnp.bfloat16)
    wv_t = jnp.asarray(wv.T, jnp.bfloat16)
    wo_t = jnp.asarray(wo.T, jnp.bfloat16)

    half = HD // 2
    lane = np.arange(HIDDEN)
    freq_idx = (lane % HD) % half                                         # rotary frequency index per lane
    inv_freq = (1.0 / (ROPE_BASE ** ((2.0 * freq_idx) / HD))).astype(np.float32)[None, :]   # (1, HIDDEN)
    sign = np.where((lane % HD) < half, 1.0, -1.0).astype(np.float32)[None, :]              # (1, HIDDEN)

    def head_mats(width):
        row = np.arange(width)[:, None]
        col = np.arange(width)[None, :]
        same_head = ((row // HD) == (col // HD)).astype(np.float32)       # block indicator
        partner = np.where((col % HD) < half, col + half, col - half)
        swap = (row == partner).astype(np.float32)                        # rotate-half permutation
        return jnp.asarray(same_head, jnp.bfloat16), jnp.asarray(swap, jnp.bfloat16)

    same_q, swap_q = head_mats(HIDDEN)
    same_k, swap_k = head_mats(KW)
    return (wq_t, wk_t, wv_t, wo_t,
            jnp.asarray(inv_freq), jnp.asarray(sign),
            same_q, swap_q, same_k, swap_k)


@jax.jit
def flex_self_attention(x, x_pos, params):
    """x: (1, S, HIDDEN) f32, x_pos: (1, S) int32, params: output of prepare_weights()."""
    # TODO(synk): on v7x with batch > 1, add a leading grid axis over batch with
    #             dimension_semantics=("parallel",) so both TensorCores participate;
    #             gridless is the right shape for B == 1 on v5e/v6e.
    vmem = pl.BlockSpec(memory_space=pltpu.MemorySpace.VMEM)
    return pl.pallas_call(
        flex_self_attention_kernel,
        out_shape=jax.ShapeDtypeStruct((B, S, HIDDEN), x.dtype),
        in_specs=[vmem] * 12,
        out_specs=vmem,
    )(x, x_pos.reshape(S, 1), *params)      # reshape is free under jit


def reference(x, x_pos, wq, wk, wv, wo):
    """Pure-JAX f32 mirror of the PyTorch forward (block_mask=None), weights in (out, in) layout."""
    inv_freq = 1.0 / (ROPE_BASE ** (jnp.arange(0, HD, 2, dtype=jnp.float32) / HD))
    t = x_pos[0].astype(jnp.float32)
    freqs = jnp.outer(t, inv_freq)
    cos, sin = jnp.cos(freqs), jnp.sin(freqs)

    q = (x @ wq.T).reshape(B, S, N_Q, HD)
    k = (x @ wk.T).reshape(B, S, N_KV, HD)
    v = (x @ wv.T).reshape(B, S, N_KV, HD)

    def rms(a):
        return a * jax.lax.rsqrt(jnp.mean(a * a, axis=-1, keepdims=True) + EPS)

    def rot(a):
        d = HD // 2
        a1, a2 = a[..., :d], a[..., d:]
        c = cos[None, :, None, :]
        s_ = sin[None, :, None, :]
        return jnp.concatenate([a1 * c + a2 * s_, -a1 * s_ + a2 * c], axis=-1)

    q = rot(rms(q))
    k = rot(rms(k))
    k = jnp.repeat(k, N_Q // N_KV, axis=2)   # GQA head sharing
    v = jnp.repeat(v, N_Q // N_KV, axis=2)
    s_ = jnp.einsum('bqhd,bkhd->bhqk', q, k) * SCALE
    p = jax.nn.softmax(s_, axis=-1)
    o = jnp.einsum('bhqk,bkhd->bqhd', p, v).reshape(B, S, HIDDEN)
    return o @ wo.T


if __name__ == "__main__":
    key = jax.random.PRNGKey(0)
    kx, kq, kk, kv, ko = jax.random.split(key, 5)
    x = jax.random.normal(kx, (B, S, HIDDEN), jnp.float32)
    x_pos = jnp.arange(S, dtype=jnp.int32)[None, :]           # (1, S) positions

    bound = 1.0 / math.sqrt(HIDDEN)                           # nn.Linear-style init range
    wq = jax.random.uniform(kq, (N_Q * HD, HIDDEN), jnp.float32, -bound, bound)
    wk = jax.random.uniform(kk, (N_KV * HD, HIDDEN), jnp.float32, -bound, bound)
    wv = jax.random.uniform(kv, (N_KV * HD, HIDDEN), jnp.float32, -bound, bound)
    # NOTE: the PyTorch __init__ zeroes out_proj.weight (output would be all-zero);
    # we use deterministic random weights so the kernel path is non-trivially exercised.
    wo = jax.random.uniform(ko, (HIDDEN, HIDDEN), jnp.float32, -bound, bound)

    # one-time layout / bf16 / constant-matrix preparation (hoisted out of the call)
    params = prepare_weights(wq, wk, wv, wo)

    out = jax.block_until_ready(flex_self_attention(x, x_pos, params))

    ref = reference(x, x_pos, wq, wk, wv, wo)
    # Tolerance accounts for bf16 MXU operands on every matmul (projections, ssq/swap constant
    # matmuls, QK^T, PV, out-projection) plus the approximate EUP softmax reciprocal.
    np.testing.assert_allclose(np.asarray(out), np.asarray(ref), atol=5e-2, rtol=5e-2)
    print("KERNEL_OK")
</pallas_src>

<mosaic_0001>
module attributes {stable_mosaic.version = 11 : i64} {
  func.func @flex_self_attention_kernel(%arg0: memref<1x8x128xf32, #tpu.memory_space<vmem>>, %arg1: memref<8x1xi32, #tpu.memory_space<vmem>>, %arg2: memref<128x128xbf16, #tpu.memory_space<vmem>>, %arg3: memref<128x64xbf16, #tpu.memory_space<vmem>>, %arg4: memref<128x64xbf16, #tpu.memory_space<vmem>>, %arg5: memref<128x128xbf16, #tpu.memory_space<vmem>>, %arg6: memref<1x128xf32, #tpu.memory_space<vmem>>, %arg7: memref<1x128xf32, #tpu.memory_space<vmem>>, %arg8: memref<128x128xbf16, #tpu.memory_space<vmem>>, %arg9: memref<128x128xbf16, #tpu.memory_space<vmem>>, %arg10: memref<64x64xbf16, #tpu.memory_space<vmem>>, %arg11: memref<64x64xbf16, #tpu.memory_space<vmem>>, %arg12: memref<1x8x128xf32, #tpu.memory_space<vmem>>) attributes {dimension_semantics = [], scalar_prefetch = 0 : i64, scratch_operands = 0 : i64, tpu.core_type = #tpu.core_type<tc>} {
    %c0 = arith.constant 0 : index
    %c0_0 = arith.constant 0 : index
    %c0_1 = arith.constant 0 : index
    %0 = vector.load %arg0[%c0, %c0_0, %c0_1] : memref<1x8x128xf32, #tpu.memory_space<vmem>>, vector<1x8x128xf32>
    %1 = vector.shape_cast %0 : vector<1x8x128xf32> to vector<8x128xf32>
    %2 = arith.truncf %1 : vector<8x128xf32> to vector<8x128xbf16>
    %c0_2 = arith.constant 0 : index
    %c0_3 = arith.constant 0 : index
    %3 = vector.load %arg2[%c0_2, %c0_3] : memref<128x128xbf16, #tpu.memory_space<vmem>>, vector<128x128xbf16>
    %cst = arith.constant dense<0.000000e+00> : vector<8x128xf32>
    %4 = tpu.matmul %2, %3, %cst {dimension_numbers = #tpu.dot_dimension_numbers<[1], [0], [0], [1], [0, 0, 1, 1], [], []>} : vector<8x128xbf16>, vector<128x128xbf16>, vector<8x128xf32> -> vector<8x128xf32>
    %c0_4 = arith.constant 0 : index
    %c0_5 = arith.constant 0 : index
    %5 = vector.load %arg3[%c0_4, %c0_5] : memref<128x64xbf16, #tpu.memory_space<vmem>>, vector<128x64xbf16>
    %cst_6 = arith.constant dense<0.000000e+00> : vector<8x64xf32>
    %6 = tpu.matmul %2, %5, %cst_6 {dimension_numbers = #tpu.dot_dimension_numbers<[1], [0], [0], [1], [0, 0, 1, 1], [], []>} : vector<8x128xbf16>, vector<128x64xbf16>, vector<8x64xf32> -> vector<8x64xf32>
    %c0_7 = arith.constant 0 : index
    %c0_8 = arith.constant 0 : index
    %7 = vector.load %arg4[%c0_7, %c0_8] : memref<128x64xbf16, #tpu.memory_space<vmem>>, vector<128x64xbf16>
    %cst_9 = arith.constant dense<0.000000e+00> : vector<8x64xf32>
    %8 = tpu.matmul %2, %7, %cst_9 {dimension_numbers = #tpu.dot_dimension_numbers<[1], [0], [0], [1], [0, 0, 1, 1], [], []>} : vector<8x128xbf16>, vector<128x64xbf16>, vector<8x64xf32> -> vector<8x64xf32>
    %c0_10 = arith.constant 0 : index
    %c0_11 = arith.constant 0 : index
    %9 = vector.load %arg1[%c0_10, %c0_11] : memref<8x1xi32, #tpu.memory_space<vmem>>, vector<8x1xi32>
    %10 = arith.sitofp %9 : vector<8x1xi32> to vector<8x1xf32>
    %c0_12 = arith.constant 0 : index
    %c0_13 = arith.constant 0 : index
    %11 = vector.load %arg6[%c0_12, %c0_13] : memref<1x128xf32, #tpu.memory_space<vmem>>, vector<1x128xf32>
    %12 = vector.broadcast %10 : vector<8x1xf32> to vector<8x128xf32>
    %13 = vector.broadcast %11 : vector<1x128xf32> to vector<8x128xf32>
    %14 = arith.mulf %12, %13 : vector<8x128xf32>
    %15 = math.cos %14 : vector<8x128xf32>
    %16 = math.sin %14 : vector<8x128xf32>
    %c0_14 = arith.constant 0 : index
    %c0_15 = arith.constant 0 : index
    %17 = vector.load %arg7[%c0_14, %c0_15] : memref<1x128xf32, #tpu.memory_space<vmem>>, vector<1x128xf32>
    %18 = vector.broadcast %17 : vector<1x128xf32> to vector<8x128xf32>
    %19 = arith.mulf %16, %18 : vector<8x128xf32>
    %cst_16 = arith.constant 0.176776692 : f32
    %20 = vector.broadcast %cst_16 : f32 to vector<8x128xf32>
    %21 = arith.mulf %15, %20 : vector<8x128xf32>
    %cst_17 = arith.constant 0.176776692 : f32
    %22 = vector.broadcast %cst_17 : f32 to vector<8x128xf32>
    %23 = arith.mulf %19, %22 : vector<8x128xf32>
    %c0_18 = arith.constant 0 : index
    %c0_19 = arith.constant 0 : index
    %24 = vector.load %arg8[%c0_18, %c0_19] : memref<128x128xbf16, #tpu.memory_space<vmem>>, vector<128x128xbf16>
    %c0_20 = arith.constant 0 : index
    %c0_21 = arith.constant 0 : index
    %25 = vector.load %arg9[%c0_20, %c0_21] : memref<128x128xbf16, #tpu.memory_space<vmem>>, vector<128x128xbf16>
    %26 = arith.mulf %4, %4 : vector<8x128xf32>
    %27 = arith.truncf %26 : vector<8x128xf32> to vector<8x128xbf16>
    %cst_22 = arith.constant dense<0.000000e+00> : vector<8x128xf32>
    %28 = tpu.matmul %27, %24, %cst_22 {dimension_numbers = #tpu.dot_dimension_numbers<[1], [0], [0], [1], [0, 0, 1, 1], [], []>} : vector<8x128xbf16>, vector<128x128xbf16>, vector<8x128xf32> -> vector<8x128xf32>
    %cst_23 = arith.constant 3.125000e-02 : f32
    %29 = vector.broadcast %cst_23 : f32 to vector<8x128xf32>
    %30 = arith.mulf %28, %29 : vector<8x128xf32>
    %cst_24 = arith.constant 1.1920929E-7 : f32
    %31 = vector.broadcast %cst_24 : f32 to vector<8x128xf32>
    %32 = arith.addf %30, %31 : vector<8x128xf32>
    %33 = math.rsqrt %32 : vector<8x128xf32>
    %34 = arith.mulf %4, %33 : vector<8x128xf32>
    %35 = arith.truncf %34 : vector<8x128xf32> to vector<8x128xbf16>
    %cst_25 = arith.constant dense<0.000000e+00> : vector<8x128xf32>
    %36 = tpu.matmul %35, %25, %cst_25 {dimension_numbers = #tpu.dot_dimension_numbers<[1], [0], [0], [1], [0, 0, 1, 1], [], []>} : vector<8x128xbf16>, vector<128x128xbf16>, vector<8x128xf32> -> vector<8x128xf32>
    %37 = arith.mulf %34, %21 : vector<8x128xf32>
    %38 = arith.mulf %36, %23 : vector<8x128xf32>
    %39 = arith.addf %37, %38 : vector<8x128xf32>
    %40 = vector.extract_strided_slice %15 {offsets = [0, 0], sizes = [8, 64], strides = [1, 1]} : vector<8x128xf32> to vector<8x64xf32>
    %41 = vector.extract_strided_slice %19 {offsets = [0, 0], sizes = [8, 64], strides = [1, 1]} : vector<8x128xf32> to vector<8x64xf32>
    %c0_26 = arith.constant 0 : index
    %c0_27 = arith.constant 0 : index
    %42 = vector.load %arg10[%c0_26, %c0_27] : memref<64x64xbf16, #tpu.memory_space<vmem>>, vector<64x64xbf16>
    %c0_28 = arith.constant 0 : index
    %c0_29 = arith.constant 0 : index
    %43 = vector.load %arg11[%c0_28, %c0_29] : memref<64x64xbf16, #tpu.memory_space<vmem>>, vector<64x64xbf16>
    %44 = arith.mulf %6, %6 : vector<8x64xf32>
    %45 = arith.truncf %44 : vector<8x64xf32> to vector<8x64xbf16>
    %cst_30 = arith.constant dense<0.000000e+00> : vector<8x64xf32>
    %46 = tpu.matmul %45, %42, %cst_30 {dimension_numbers = #tpu.dot_dimension_numbers<[1], [0], [0], [1], [0, 0, 1, 1], [], []>} : vector<8x64xbf16>, vector<64x64xbf16>, vector<8x64xf32> -> vector<8x64xf32>
    %cst_31 = arith.constant 3.125000e-02 : f32
    %47 = vector.broadcast %cst_31 : f32 to vector<8x64xf32>
    %48 = arith.mulf %46, %47 : vector<8x64xf32>
    %cst_32 = arith.constant 1.1920929E-7 : f32
    %49 = vector.broadcast %cst_32 : f32 to vector<8x64xf32>
    %50 = arith.addf %48, %49 : vector<8x64xf32>
    %51 = math.rsqrt %50 : vector<8x64xf32>
    %52 = arith.mulf %6, %51 : vector<8x64xf32>
    %53 = arith.truncf %52 : vector<8x64xf32> to vector<8x64xbf16>
    %cst_33 = arith.constant dense<0.000000e+00> : vector<8x64xf32>
    %54 = tpu.matmul %53, %43, %cst_33 {dimension_numbers = #tpu.dot_dimension_numbers<[1], [0], [0], [1], [0, 0, 1, 1], [], []>} : vector<8x64xbf16>, vector<64x64xbf16>, vector<8x64xf32> -> vector<8x64xf32>
    %55 = arith.mulf %52, %40 : vector<8x64xf32>
    %56 = arith.mulf %54, %41 : vector<8x64xf32>
    %57 = arith.addf %55, %56 : vector<8x64xf32>
    %58 = arith.truncf %8 : vector<8x64xf32> to vector<8x64xbf16>
    %59 = vector.extract_strided_slice %57 {offsets = [0, 0], sizes = [8, 32], strides = [1, 1]} : vector<8x64xf32> to vector<8x32xf32>
    %60 = arith.truncf %59 : vector<8x32xf32> to vector<8x32xbf16>
    %61 = vector.extract_strided_slice %39 {offsets = [0, 0], sizes = [8, 32], strides = [1, 1]} : vector<8x128xf32> to vector<8x32xf32>
    %62 = vector.extract_strided_slice %39 {offsets = [0, 32], sizes = [8, 32], strides = [1, 1]} : vector<8x128xf32> to vector<8x32xf32>
    %63 = tpu.concatenate %61, %62 in 0 : vector<8x32xf32>, vector<8x32xf32> -> vector<16x32xf32>
    %64 = arith.truncf %63 : vector<16x32xf32> to vector<16x32xbf16>
    %cst_34 = arith.constant dense<0.000000e+00> : vector<16x8xf32>
    %65 = tpu.matmul %64, %60, %cst_34 {dimension_numbers = #tpu.dot_dimension_numbers<[1], [1], [0], [0], [0, 0, 1, 0], [], []>} : vector<16x32xbf16>, vector<8x32xbf16>, vector<16x8xf32> -> vector<16x8xf32>
    %66 = math.exp %65 : vector<16x8xf32>
    %cst_35 = arith.constant dense<0.000000e+00> : vector<16xf32>
    %67 = vector.multi_reduction <add>, %66, %cst_35 [1] : vector<16x8xf32> to vector<16xf32>
    %68 = vector.shape_cast %67 : vector<16xf32> to vector<16x1xf32>
    %69 = tpu.reciprocal %68 {approx = true} : vector<16x1xf32> -> vector<16x1xf32>
    %70 = vector.broadcast %69 : vector<16x1xf32> to vector<16x8xf32>
    %71 = arith.mulf %66, %70 : vector<16x8xf32>
    %72 = arith.truncf %71 : vector<16x8xf32> to vector<16x8xbf16>
    %73 = vector.extract_strided_slice %58 {offsets = [0, 0], sizes = [8, 32], strides = [1, 1]} : vector<8x64xbf16> to vector<8x32xbf16>
    %cst_36 = arith.constant dense<0.000000e+00> : vector<16x32xf32>
    %74 = tpu.matmul %72, %73, %cst_36 {dimension_numbers = #tpu.dot_dimension_numbers<[1], [0], [0], [1], [0, 0, 1, 1], [], []>} : vector<16x8xbf16>, vector<8x32xbf16>, vector<16x32xf32> -> vector<16x32xf32>
    %75 = vector.extract_strided_slice %74 {offsets = [0, 0], sizes = [8, 32], strides = [1, 1]} : vector<16x32xf32> to vector<8x32xf32>
    %76 = vector.extract_strided_slice %74 {offsets = [8, 0], sizes = [8, 32], strides = [1, 1]} : vector<16x32xf32> to vector<8x32xf32>
    %77 = vector.extract_strided_slice %57 {offsets = [0, 32], sizes = [8, 32], strides = [1, 1]} : vector<8x64xf32> to vector<8x32xf32>
    %78 = arith.truncf %77 : vector<8x32xf32> to vector<8x32xbf16>
    %79 = vector.extract_strided_slice %39 {offsets = [0, 64], sizes = [8, 32], strides = [1, 1]} : vector<8x128xf32> to vector<8x32xf32>
    %80 = vector.extract_strided_slice %39 {offsets = [0, 96], sizes = [8, 32], strides = [1, 1]} : vector<8x128xf32> to vector<8x32xf32>
    %81 = tpu.concatenate %79, %80 in 0 : vector<8x32xf32>, vector<8x32xf32> -> vector<16x32xf32>
    %82 = arith.truncf %81 : vector<16x32xf32> to vector<16x32xbf16>
    %cst_37 = arith.constant dense<0.000000e+00> : vector<16x8xf32>
    %83 = tpu.matmul %82, %78, %cst_37 {dimension_numbers = #tpu.dot_dimension_numbers<[1], [1], [0], [0], [0, 0, 1, 0], [], []>} : vector<16x32xbf16>, vector<8x32xbf16>, vector<16x8xf32> -> vector<16x8xf32>
    %84 = math.exp %83 : vector<16x8xf32>
    %cst_38 = arith.constant dense<0.000000e+00> : vector<16xf32>
    %85 = vector.multi_reduction <add>, %84, %cst_38 [1] : vector<16x8xf32> to vector<16xf32>
    %86 = vector.shape_cast %85 : vector<16xf32> to vector<16x1xf32>
    %87 = tpu.reciprocal %86 {approx = true} : vector<16x1xf32> -> vector<16x1xf32>
    %88 = vector.broadcast %87 : vector<16x1xf32> to vector<16x8xf32>
    %89 = arith.mulf %84, %88 : vector<16x8xf32>
    %90 = arith.truncf %89 : vector<16x8xf32> to vector<16x8xbf16>
    %91 = vector.extract_strided_slice %58 {offsets = [0, 32], sizes = [8, 32], strides = [1, 1]} : vector<8x64xbf16> to vector<8x32xbf16>
    %cst_39 = arith.constant dense<0.000000e+00> : vector<16x32xf32>
    %92 = tpu.matmul %90, %91, %cst_39 {dimension_numbers = #tpu.dot_dimension_numbers<[1], [0], [0], [1], [0, 0, 1, 1], [], []>} : vector<16x8xbf16>, vector<8x32xbf16>, vector<16x32xf32> -> vector<16x32xf32>
    %93 = vector.extract_strided_slice %92 {offsets = [0, 0], sizes = [8, 32], strides = [1, 1]} : vector<16x32xf32> to vector<8x32xf32>
    %94 = vector.extract_strided_slice %92 {offsets = [8, 0], sizes = [8, 32], strides = [1, 1]} : vector<16x32xf32> to vector<8x32xf32>
    %95 = tpu.concatenate %75, %76, %93, %94 in 1 : vector<8x32xf32>, vector<8x32xf32>, vector<8x32xf32>, vector<8x32xf32> -> vector<8x128xf32>
    %96 = arith.truncf %95 : vector<8x128xf32> to vector<8x128xbf16>
    %c0_40 = arith.constant 0 : index
    %c0_41 = arith.constant 0 : index
    %97 = vector.load %arg5[%c0_40, %c0_41] : memref<128x128xbf16, #tpu.memory_space<vmem>>, vector<128x128xbf16>
    %cst_42 = arith.constant dense<0.000000e+00> : vector<8x128xf32>
    %98 = tpu.matmul %96, %97, %cst_42 {dimension_numbers = #tpu.dot_dimension_numbers<[1], [0], [0], [1], [0, 0, 1, 1], [], []>} : vector<8x128xbf16>, vector<128x128xbf16>, vector<8x128xf32> -> vector<8x128xf32>
    %c0_43 = arith.constant 0 : index
    %c0_44 = arith.constant 0 : index
    %c0_45 = arith.constant 0 : index
    %99 = vector.load %arg12[%c0_43, %c0_44, %c0_45] : memref<1x8x128xf32, #tpu.memory_space<vmem>>, vector<1x8x128xf32>
    %100 = vector.shape_cast %99 : vector<1x8x128xf32> to vector<8x128xf32>
    %101 = vector.shape_cast %98 : vector<8x128xf32> to vector<1x8x128xf32>
    tpu.vector_store %arg12[%c0_43, %c0_44, %c0_45], %101 {strides = array<i32>} : memref<1x8x128xf32, #tpu.memory_space<vmem>>, vector<1x8x128xf32>,
    return
  }
}

</mosaic_0001>

<bundles_post_ra>
// kernel: flex_self_attention.1
= control target key start
LH: loop header
LB: loop body
LE: loop exit
PB: predicated region body
PF: predicated region fallthrough
CT: control target
= control target key end

     0   :  { %17 = vsyncpa [#allocation3], 0  ;;  %s1972_s0 = inlined_call_operand.vmem [shape: f32[1,8,128], index: 0, kind: input, shape index: {}]   ;;  %s1973_s1 = inlined_call_operand.vmem [shape: s32[8,1], index: 1, kind: input, shape index: {}]   ;;  %s1974_s2 = inlined_call_operand.vmem [shape: bf16[128,128], index: 2, kind: input, shape index: {}]   ;;  %s1975_s3 = inlined_call_operand.vmem [shape: bf16[128,64], index: 3, kind: input, shape index: {}]   ;;  %s1976_s4 = inlined_call_operand.vmem [shape: bf16[128,64], index: 4, kind: input, shape index: {}]   ;;  %s1977_s5 = inlined_call_operand.vmem [shape: bf16[128,128], index: 5, kind: input, shape index: {}]   ;;  %s1978_s6 = inlined_call_operand.vmem [shape: f32[1,128], index: 6, kind: input, shape index: {}]   ;;  %s1979_s7 = inlined_call_operand.vmem [shape: f32[1,128], index: 7, kind: input, shape index: {}]   ;;  %s1980_s8 = inlined_call_operand.hbm [shape: bf16[128,128], index: 8, kind: input, shape index: {}]   ;;  %s1981_s9 = inlined_call_operand.hbm [shape: bf16[128,128], index: 9, kind: input, shape index: {}]   ;;  %s1982_s10 = inlined_call_operand.vmem [shape: bf16[64,64], index: 10, kind: input, shape index: {}]   ;;  %s1983_s11 = inlined_call_operand.hbm [shape: bf16[64,64], index: 11, kind: input, shape index: {}]   ;;  %s1984_s12 = inlined_call_operand.hbm [shape: f32[1,8,128], index: 12, kind: output, shape index: {}]  }
   0x1   :  { %18 = vsyncpa [#allocation6], 0 }
   0x2   :  { %19 = vsyncpa [#allocation4], 0  ;;  %s53_s23 = sshll.u32 %s1981_s9, 4  ;;  %s1616_s24 = smov [#allocation5]   ;;  %s54_s23 = int_to_ptr.hbm [resolvable:$true] %s53_s23 }
   0x3   :  { %s55_s25 = sshll.u32 %s1616_s24, 4  ;;  %s40_s28 = sshll.u32 %s1980_s8, 4  ;;  %s56_s25 = int_to_ptr.vmem [resolvable:$true] %s55_s25  ;;  %s41_s28 = int_to_ptr.hbm [resolvable:$true] %s40_s28 }
   0x4   :  { %s1617_s29 = smov 64   ;;  %s1618_s30 = smov 4  }
   0x5   :  { %61 = dma.hbm_to_vmem [thread:$0]  %s54_s23, 1024, %s56_s25, [#allocation6], %s1617_s29, %s1617_s29, %s1618_s30  }
   0x6   :  { %s1619_s13 = smov [#allocation2]   ;;  %s68_s9 = sshll.u32 %s1983_s11, 4  ;;  %s69_s9 = int_to_ptr.hbm [resolvable:$true] %s68_s9 }
   0x7   :  { %s42_s14 = sshll.u32 %s1619_s13, 4  ;;  %s1620_s17 = smov [#allocation7]   ;;  %s43_s14 = int_to_ptr.vmem [resolvable:$true] %s42_s14 }
   0x8   :  { %48 = dma.hbm_to_vmem [thread:$0]  %s41_s28, 1024, %s43_s14, [#allocation3], %s1617_s29, %s1617_s29, %s1618_s30  }
   0x9   :  { %s70_s18 = sshll.u32 %s1620_s17, 4  ;;  %s71_s18 = int_to_ptr.vmem [resolvable:$true] %s70_s18 }
   0xa   :  { %76 = dma.hbm_to_vmem [thread:$0]  %s69_s9, 512, %s71_s18, [#allocation6], %s1617_s29, %s1617_s29, %s1618_s30  }
   0xb   :  { %1610 = dma.done.wait [#allocation3], 1024  }
   0xc   :  { %1611 = vsyncadd [#allocation3], 4294966272 }
   0xd   :  { %1612 = dma.done.wait [#allocation6], 1536  }
   0xe   :  { %1613 = vsyncadd [#allocation6], 4294965760  ;;  %v1427_v0 = vld [vmem:[%s1974_s2 + $0x38] sm:$0xff]  ;;  %v1426_v2 = vld [vmem:[%s1974_s2 + $0x30] sm:$0xff]  ;;  %v1621_v4 = vmov 0   ;;  %vm866_vm0 = vcmask 523264  }
   0xf   :  { %v1435_v1 = vld [vmem:[%s1975_s3 + $0x38] sm:$0xff]  ;;  %156 = vmatpush.bf16.msra.mxu0 %v1427_v0  ;;  %v1434_v3 = vld [vmem:[%s1975_s3 + $0x30] sm:$0xff]  ;;  %1491 = vset.pattern.permute.xlu0 %v1621_v4  ;;  %v323_v5 = vld [vmem:[%s1973_s1] sm:$0xff]  ;;  %v1622_v62 = vmov 2102212464   ;;  %s1628_s1 = smov 96  }
  0x10   :  { %233 = vmatpush.bf16.msra.mxu1 %v1435_v1  ;;  %v1425_v6 = vld [vmem:[%s1974_s2 + $0x28] sm:$0xff]  ;;  %v324_v8 = vcvt.s32.f32 %v323_v5  ;;  %v1451_v9 = vld [vmem:[#allocation2 + $0x38] sm:$0xff]  ;;  %v1450_v10 = vld [vmem:[#allocation2 + $0x30] sm:$0xff]  ;;  %v1623_v0 = vmov 920167782   ;;  %s1173_s28 = sshll.u32 %s1984_s12, 4  ;;  %s1174_s28 = int_to_ptr.hbm [resolvable:$true] %s1173_s28 }
  0x11   :  { %v1433_v7 = vld [vmem:[%s1975_s3 + $0x28] sm:$0xff]  ;;  %733 = vmatpush.bf16.msra.mxu3 %v1451_v9  ;;  %v1424_v11 = vld [vmem:[%s1974_s2 + $0x20] sm:$0xff]  ;;  %v1423_v14 = vld [vmem:[%s1974_s2 + $0x18] sm:$0xff]  ;;  %v1625_v9 = vmov 683565275  }
  0x12   :  { %328 = vperm.xlu0 %1491, %v324_v8   ;;  %v1432_v12 = vld [vmem:[%s1975_s3 + $0x20] sm:$0xff]  ;;  %v1449_v13 = vld [vmem:[#allocation2 + $0x28] sm:$0xff]  ;;  %v1431_v15 = vld [vmem:[%s1975_s3 + $0x18] sm:$0xff] }
  0x13   :  { %157 = vmatpush.bf16.msra.mxu0 %v1426_v2  ;;  %v1448_v16 = vld [vmem:[#allocation2 + $0x20] sm:$0xff]  ;;  %v1422_v17 = vld [vmem:[%s1974_s2 + $0x10] sm:$0xff]  ;;  %v1447_v19 = vld [vmem:[#allocation2 + $0x18] sm:$0xff] }
  0x14   :  { %234 = vmatpush.bf16.msra.mxu1 %v1434_v3  ;;  %v1430_v18 = vld [vmem:[%s1975_s3 + $0x10] sm:$0xff]  ;;  %v1421_v20 = vld [vmem:[%s1974_s2 + $0x8] sm:$0xff]  ;;  %v1420_v23 = vld [vmem:[%s1974_s2] sm:$0xff] }
  0x15   :  { %734 = vmatpush.bf16.msra.mxu3 %v1450_v10  ;;  %v1429_v21 = vld [vmem:[%s1975_s3 + $0x8] sm:$0xff]  ;;  %v1446_v22 = vld [vmem:[#allocation2 + $0x10] sm:$0xff]  ;;  %v1428_v24 = vld [vmem:[%s1975_s3] sm:$0xff] }
  0x16   :  { %v90_v25 = vld [vmem:[%s1972_s0] sm:$0xff]  ;;  %v1463_v26 = vld [vmem:[%s1982_s10 + $0x18] sm:$0xff]  ;;  %v1445_v27 = vld [vmem:[#allocation2 + $0x8] sm:$0xff] }
  0x17   :  { %158 = vmatpush.bf16.msra.mxu0 %v1425_v6  ;;  %v1769_v28 = vpack.c.bf16 %v90_v25, %v90_v25  ;;  %v1462_v29 = vld [vmem:[%s1982_s10 + $0x10] sm:$0xff]  ;;  %v1461_v30 = vld [vmem:[%s1982_s10 + $0x8] sm:$0xff]  ;;  %v1444_v31 = vld [vmem:[#allocation2] sm:$0xff]  ;;  %v1624_v6 = vmov 1326507024  }
  0x18   :  { %235 = vmatpush.bf16.msra.mxu1 %v1433_v7  ;;  %v1460_v32 = vld [vmem:[%s1982_s10] sm:$0xff]  ;;  %v1443_v41 = vld [vmem:[%s1976_s4 + $0x38] sm:$0xff]  ;;  %v1442_v42 = vld [vmem:[%s1976_s4 + $0x30] sm:$0xff] }
  0x19   :  { %735 = vmatpush.bf16.msra.mxu3 %v1449_v13  ;;  %310 = vmatpush.bf16.msra.mxu2 %v1443_v41  ;;  %v1441_v43 = vld [vmem:[%s1976_s4 + $0x28] sm:$0xff]  ;;  %v1440_v44 = vld [vmem:[%s1976_s4 + $0x20] sm:$0xff]  ;;  %v1439_v45 = vld [vmem:[%s1976_s4 + $0x18] sm:$0xff] }
  0x1a   :  { %v1438_v46 = vld [vmem:[%s1976_s4 + $0x10] sm:$0xff]  ;;  %v1492_v47 = vld [vmem:[%s1978_s6] ss:$0 sm:$0xff]  ;;  %v1459_v55 = vld [vmem:[#allocation5 + $0x38] sm:$0xff] }
  0x1b   :  { %159 = vmatpush.bf16.msra.mxu0 %v1424_v11  ;;  %v1437_v57 = vld [vmem:[%s1976_s4 + $0x8] sm:$0xff]  ;;  %v1458_v58 = vld [vmem:[#allocation5 + $0x30] sm:$0xff]  ;;  %v1436_v60 = vld [vmem:[%s1976_s4] sm:$0xff]  ;;  %v1626_v11 = vmov 2475754826  }
  0x1c   :  { %236 = vmatpush.bf16.msra.mxu1 %v1432_v12  ;;  %v1457_v61 = vld [vmem:[#allocation5 + $0x28] sm:$0xff]  ;;  %v1467_v8 = vld [vmem:[#allocation7 + $0x18] sm:$0xff] }
  0x1d   :  { %736 = vmatpush.bf16.msra.mxu3 %v1448_v16  ;;  %311 = vmatpush.bf16.msra.mxu2 %v1442_v42  ;;  %v1453_v42 = vld [vmem:[#allocation5 + $0x8] sm:$0xff] }
  0x1f   :  { %160 = vmatpush.bf16.msra.mxu0 %v1423_v14  ;;  %v1627_v14 = vmov 2131351028  }
  0x20   :  { %237 = vmatpush.bf16.msra.mxu1 %v1431_v15 }
  0x21   :  { %737 = vmatpush.bf16.msra.mxu3 %v1447_v19  ;;  %312 = vmatpush.bf16.msra.mxu2 %v1441_v43 }
  0x23   :  { %161 = vmatpush.bf16.msra.mxu0 %v1422_v17 }
  0x24   :  { %238 = vmatpush.bf16.msra.mxu1 %v1430_v18  ;;  %v1456_v18 = vld [vmem:[#allocation5 + $0x20] sm:$0xff] }
  0x25   :  { %738 = vmatpush.bf16.msra.mxu3 %v1446_v22  ;;  %313 = vmatpush.bf16.msra.mxu2 %v1440_v44  ;;  %v1466_v22 = vld [vmem:[#allocation7 + $0x10] sm:$0xff] }
  0x27   :  { %162 = vmatpush.bf16.msra.mxu0 %v1421_v20 }
  0x28   :  { %239 = vmatpush.bf16.msra.mxu1 %v1429_v21 }
  0x29   :  { %739 = vmatpush.bf16.msra.mxu3 %v1445_v27  ;;  %314 = vmatpush.bf16.msra.mxu2 %v1439_v45 }
  0x2b   :  { %163 = vmatpush.bf16.msra.mxu0 %v1420_v23 }
  0x2c   :  { %240 = vmatpush.bf16.msra.mxu1 %v1428_v24 }
  0x2d   :  { %740 = vmatpush.bf16.msra.mxu3 %v1444_v31  ;;  %315 = vmatpush.bf16.msra.mxu2 %v1438_v46  ;;  %v1452_v46 = vld [vmem:[#allocation5] sm:$0xff] }
  0x2e   :  { %164 = vmatmul.bf16.vlgmr.msra.gmra.mxu0 %v1769_v28 }
  0x2f   :  { %241 = vmatmul.bf16.vlgmr.msra.gmra.mxu1 %v1769_v28  ;;  %808 = vmatpush.bf16.msrb.mxu0 %v1459_v55 }
  0x30   :  { %874 = vmatpush.bf16.msrb.mxu1 %v1463_v26  ;;  %v1455_v26 = vld [vmem:[#allocation5 + $0x18] sm:$0xff] }
  0x31   :  { %316 = vmatpush.bf16.msra.mxu2 %v1437_v57 }
  0x33   :  { %809 = vmatpush.bf16.msrb.mxu0 %v1458_v58 }
  0x34   :  { %875 = vmatpush.bf16.msrb.mxu1 %v1462_v29 }
  0x35   :  { %317 = vmatpush.bf16.msra.mxu2 %v1436_v60 }
  0x37   :  { %810 = vmatpush.bf16.msrb.mxu0 %v1457_v61 }
  0x38   :  { %876 = vmatpush.bf16.msrb.mxu1 %v1461_v30  ;;  %318 = vmatmul.bf16.vlgmr.msra.gmra.mxu2 %v1769_v28  ;;  %v1465_v30 = vld [vmem:[#allocation7 + $0x8] sm:$0xff] }
  0x39   :  { %928 = vmatpush.bf16.msrb.mxu2 %v1467_v8 }
  0x3b   :  { %811 = vmatpush.bf16.msrb.mxu0 %v1456_v18 }
  0x3c   :  { %877 = vmatpush.bf16.msrb.mxu1 %v1460_v32 }
  0x3d   :  { %929 = vmatpush.bf16.msrb.mxu2 %v1466_v22 }
  0x3f   :  { %812 = vmatpush.bf16.msrb.mxu0 %v1455_v26 }
  0x41   :  { %930 = vmatpush.bf16.msrb.mxu2 %v1465_v30 }
  0x84   :  { %v329_v48 = vpop.permute.xlu0 %328 }
  0x85   :  { %v1812_v49 = vmul.f32 %v1492_v47, %v329_v48 }
  0x87   :  { %v338_v50 = vand.u32 2139095040, %v1812_v49  ;;  %v335_v2 = vand.u32 2147483647, %v1812_v49 }
  0x89   :  { %v339_v51 = vshrl.u32 %v338_v50, 23  ;;  %v342_v20 = vand.u32 8388607, %v335_v2 }
  0x8b   :  { %v1280_v52 = vadd.s32 4294967169, %v339_v51  ;;  %v343_v28 = vor.u32 8388608, %v342_v20 }
  0x8d   :  { %v345_v53 = vadd.s32 1, %v1280_v52 }
  0x8f   :  { %vm346_vm1 = vcmp.gt.s32.totalorder %v345_v53, 0 }
  0x90   :  { %v347_v54 = vsel %vm346_vm1, %v345_v53, 0 }
  0x91   :  { %v349_v56 = vand.u32 31, %v347_v54  ;;  %v1825_v3 = vshrl.u32 %v347_v54, 5 }
  0x93   :  { %v1818_v59 = vsub.s32 32, %v349_v56  ;;  %v361_v63 = vshll.u32 %v1622_v62, %v349_v56  ;;  %v364_v5 = vshll.u32 %v1623_v0, %v349_v56  ;;  %v352_v10 = vshll.u32 %v1625_v9, %v349_v56 }
  0x94   :  { %v355_v12 = vshll.u32 %v1626_v11, %v349_v56  ;;  %v358_v16 = vshll.u32 %v1627_v14, %v349_v56  ;;  %vm370_vm2 = vcmp.lt.s32.totalorder %v1825_v3, 4  ;;  %vm367_vm3 = vcmp.lt.s32.totalorder %v1825_v3, 1 }
  0x95   :  { %v362_v1 = vshrl.u32 %v1623_v0, %v1818_v59  ;;  %v365_v7 = vshrl.u32 %v1624_v6, %v1818_v59  ;;  %v353_v13 = vshrl.u32 %v1626_v11, %v1818_v59  ;;  %v356_v15 = vshrl.u32 %v1627_v14, %v1818_v59 }
  0x96   :  { %v359_v17 = vshrl.u32 %v1622_v62, %v1818_v59  ;;  %vm369_vm4 = vcmp.lt.s32.totalorder %v1825_v3, 3  ;;  %vm368_vm5 = vcmp.lt.s32.totalorder %v1825_v3, 2 }
  0x97   :  { %v363_v19 = vor.u32 %v362_v1, %v361_v63  ;;  %v366_v21 = vor.u32 %v365_v7, %v364_v5  ;;  %v1836_v23 = vor.u32 %v353_v13, %v352_v10  ;;  %v1838_v24 = vor.u32 %v356_v15, %v355_v12 }
  0x98   :  { %v1840_v25 = vor.u32 %v359_v17, %v358_v16 }
  0x99   :  { %v376_v27 = vsel %vm370_vm2, %v363_v19, 920167782  ;;  %v380_v29 = vsel %vm370_vm2, %v366_v21, 1326507024  ;;  %v375_v31 = vsel %vm367_vm3, %v1836_v23, %v1838_v24 }
  0x9a   :  { %v377_v32 = vsel %vm369_vm4, %v1840_v25, %v376_v27 }
  0xab   :  { %v1782_v33 = vpop.f32.mrf.mxu0 }
  0xac   :  { %v1784_v34 = vpop.f32.mrf.mxu1  ;;  %v683_v35 = vmul.f32 %v1782_v33, %v1782_v33 }
  0xad   :  { %v840_v36 = vmul.f32 %v1784_v34, %v1784_v34 }
  0xae   :  { %v684_v38 = vpack.c.bf16 %v683_v35, %v683_v35  ;;  %v1454_v35 = vld [vmem:[#allocation5 + $0x10] sm:$0xff] }
  0xaf   :  { %v841_v37 = vpack.c.bf16 %v840_v36, %v840_v36  ;;  %v379_v36 = vsel %vm367_vm3, %v1838_v24, %v1840_v25  ;;  %813 = vmatpush.bf16.msrb.mxu0 %v1454_v35 }
  0xb0   :  { %741 = vmatmul.bf16.vlgmr.msra.gmra.mxu3 %v684_v38  ;;  %v1862_v38 = vshll.u32 %v343_v28, 8 }
  0xb1   :  { %1366 = vmatmul.msk.bf16.vlgmr.msrb.gmra.mxu1 %vm866_vm0, %v841_v37  ;;  %v381_v37 = vsel %vm369_vm4, %v363_v19, %v380_v29 }
  0xb2   :  { %v382_v41 = vsel %vm368_vm5, %v379_v36, %v381_v37  ;;  %v384_v43 = vand.u32 65535, %v1862_v38  ;;  %v385_v47 = vshrl.u32 %v1862_v38, 16  ;;  %v351_v36 = vshrl.u32 %v1625_v9, %v1818_v59 }
  0xb3   :  { %v167_v39 = vpop.f32.mrf.mxu0  ;;  %814 = vmatpush.bf16.msrb.mxu0 %v1453_v42  ;;  %v387_v45 = vshrl.u32 %v382_v41, 16  ;;  %v386_v51 = vand.u32 65535, %v382_v41 }
  0xb4   :  { %v244_v40 = vpop.f32.mrf.mxu1  ;;  %v1464_v39 = vld [vmem:[#allocation7] sm:$0xff]  ;;  %v371_v59 = vsel %vm367_vm3, %v351_v36, %v1836_v23 }
  0xb5   :  { %v378_v40 = vsel %vm368_vm5, %v375_v31, %v377_v32  ;;  %931 = vmatpush.bf16.msrb.mxu2 %v1464_v39  ;;  %v389_v52 = vmul.u32 %v387_v45, %v384_v43  ;;  %v388_v58 = vmul.u32 %v386_v51, %v384_v43  ;;  %v390_v60 = vmul.u32 %v386_v51, %v385_v47 }
  0xb6   :  { %v409_v44 = vshrl.u32 %v378_v40, 16  ;;  %v408_v48 = vand.u32 65535, %v378_v40  ;;  %v391_v11 = vmul.u32 %v387_v45, %v385_v47 }
  0xb7   :  { %815 = vmatpush.bf16.msrb.mxu0 %v1452_v46  ;;  %v392_v61 = vshll.u32 %v389_v52, 16  ;;  %v394_v5 = vshll.u32 %v390_v60, 16  ;;  %v393_v30 = vshrl.u32 %v389_v52, 16  ;;  %v395_v41 = vshrl.u32 %v390_v60, 16 }
  0xb8   :  { %v411_v50 = vmul.u32 %v409_v44, %v384_v43  ;;  %v410_v55 = vmul.u32 %v408_v48, %v384_v43  ;;  %v412_v56 = vmul.u32 %v408_v48, %v385_v47  ;;  %v413_v8 = vmul.u32 %v409_v44, %v385_v47 }
  0xb9   :  { %vm396_vm7 = vc.u32 %v388_v58, %v392_v61  ;;  %v398_v6 = vadd.s32 %v392_v61, %v388_v58  ;;  %v372_v43 = vsel %vm370_vm2, %v1840_v25, 2102212464 }
  0xba   :  { %v414_v57 = vshll.u32 %v411_v50, 16  ;;  %v416_v63 = vshll.u32 %v412_v56, 16  ;;  %v397_v14 = vsel %vm396_vm7, 1, %v1621_v4  ;;  %v415_v26 = vshrl.u32 %v411_v50, 16 }
  0xbb   :  { %vm400_vm9 = vc.u32 %v398_v6, %v394_v5  ;;  %v399_v18 = vadd.s32 %v397_v14, %v391_v11  ;;  %v417_v37 = vshrl.u32 %v412_v56, 16  ;;  %v373_v48 = vsel %vm369_vm4, %v1838_v24, %v372_v43 }
  0xbc   :  { %vm418_vm6 = vc.u32 %v410_v55, %v414_v57  ;;  %v420_v0 = vadd.s32 %v414_v57, %v410_v55  ;;  %v401_v20 = vsel %vm400_vm9, 1, %v1621_v4  ;;  %vm337_vm4 = vcmp.lt.s32.totalorder %v1812_v49, 0 }
  0xbd   :  { %v419_v12 = vsel %vm418_vm6, 1, %v1621_v4  ;;  %v403_v31 = vadd.s32 %v401_v20, %v399_v18  ;;  %vm987_vm6 = vcmask 1043456  }
  0xbe   :  { %vm422_vm8 = vc.u32 %v420_v0, %v416_v63  ;;  %v421_v16 = vadd.s32 %v419_v12, %v413_v8  ;;  %v424_v51 = vadd.s32 %v420_v0, %v416_v63 }
  0xbf   :  { %v423_v19 = vsel %vm422_vm8, 1, %v1621_v4  ;;  %v404_v42 = vadd.s32 %v403_v31, %v393_v30 }
  0xc0   :  { %v425_v27 = vadd.s32 %v423_v19, %v421_v16 }
  0xc1   :  { %v405_v50 = vadd.s32 %v404_v42, %v395_v41 }
  0xc2   :  { %v426_v39 = vadd.s32 %v425_v27, %v415_v26 }
  0xc3   :  { %vm430_vm1 = vc.u32 %v405_v50, %v424_v51  ;;  %v429_v6 = vadd.s32 %v424_v51, %v405_v50 }
  0xc4   :  { %v427_v9 = vadd.s32 %v426_v39, %v417_v37 }
  0xc6   :  { %v431_v23 = vadd.s32 1, %v427_v9 }
  0xc8   :  { %v432_v56 = vsel %vm430_vm1, %v431_v23, %v427_v9  ;;  %vm1085_vm1 = vcmask 785408  }
 0x12e   :  { %v879_v53 = vpop.f32.mrf.mxu1 }
 0x12f   :  { %v883_v54 = vmul.f32 0.03125, %v879_v53 }
 0x131   :  { %v884_v62 = vadd.f32 1.1920929e-07, %v883_v54 }
 0x133   :  { %1494 = vrsqrt.f32 %v884_v62  ;;  %v742_v1 = vpop.f32.mrf.mxu3  ;;  %vm891_vm10 = vweird.f32 %v884_v62 }
 0x134   :  { %v746_v7 = vmul.f32 0.03125, %v742_v1 }
 0x136   :  { %v881_v10 = vpop.f32.mrf.mxu1  ;;  %v747_v13 = vadd.f32 1.1920929e-07, %v746_v7 }
 0x138   :  { %1496 = vrsqrt.f32 %v747_v13  ;;  %vm754_vm14 = vweird.f32 %v747_v13 }
 0x139   :  { %v1495_v15 = vpop.eup %1494 }
 0x13a   :  { %v886_v17 = vmul.f32 %v1495_v15, %v884_v62  ;;  %vm892_vm11 = vweird.f32 %v1495_v15 }
 0x13b   :  { %v744_v22 = vpop.f32.mrf.mxu3  ;;  %vm893_vm12 = vmor %vm891_vm10, %vm892_vm11 }
 0x13c   :  { %v887_v21 = vmul.f32 %v1495_v15, %v886_v17  ;;  %v319_v22 = vpop.f32.mrf.mxu2 }
 0x13d   :  { %v1911_v26 = vpack.c.bf16 %v319_v22, %v319_v22 }
 0x13e   :  { %v888_v28 = vmul.f32 0.5, %v887_v21  ;;  %v1497_v29 = vpop.eup %1496 }
 0x13f   :  { %v749_v35 = vmul.f32 %v1497_v29, %v747_v13  ;;  %vm755_vm13 = vweird.f32 %v1497_v29  ;;  %v989_v27 = vsel %vm987_vm6, %v1911_v26, 0 }
 0x140   :  { %v889_v32 = vsub.f32 1.5, %v888_v28  ;;  %vm756_vm15 = vmor %vm754_vm14, %vm755_vm13  ;;  %998 = vmatpush.bf16.msra.mxu1 %v989_v27  ;;  %vm478_vm13 = vweird.f32 %v1812_v49  ;;  %vm947_vm14 = vcmask 261120  }
 0x141   :  { %v750_v4 = vmul.f32 %v1497_v29, %v749_v35 }
 0x142   :  { %v890_v40 = vmul.f32 %v1495_v15, %v889_v32 }
 0x143   :  { %v751_v45 = vmul.f32 0.5, %v750_v4 }
 0x144   :  { %v894_v44 = vsel %vm893_vm12, %v1495_v15, %v890_v40 }
 0x145   :  { %v1880_v46 = vmul.f32 %v894_v44, %v1784_v34  ;;  %v752_v47 = vsub.f32 1.5, %v751_v45  ;;  %v374_v34 = vsel %vm368_vm5, %v371_v59, %v373_v48  ;;  %vm1902_vm5 = vcmp.le.f32.partialorder %v335_v2, 0.7853982  ;;  %v321_v2 = vpop.f32.mrf.mxu2 }
 0x146   :  { %v428_v24 = vmul.u32 %v1862_v38, %v374_v34 }
 0x147   :  { %v896_v25 = vpack.c.bf16 %v1880_v46, %v1880_v46  ;;  %v753_v52 = vmul.f32 %v1497_v29, %v752_v47 }
 0x148   :  { %v433_v57 = vadd.s32 %v432_v56, %v428_v24 }
 0x149   :  { %1383 = vmatmul.msk.bf16.vlgmr.msrb.gmra.mxu2 %vm866_vm0, %v896_v25  ;;  %v757_v53 = vsel %vm756_vm15, %v1497_v29, %v753_v52  ;;  %vm972_vm15 = vcmask 64512  }
 0x14a   :  { %v1894_v54 = vmul.f32 %v757_v53, %v1782_v33  ;;  %v434_v58 = vadd.s32 536870912, %v433_v57  ;;  %v1493_v53 = vld [vmem:[%s1979_s7] ss:$0 sm:$0xff]  ;;  %s1629_s7 = smov 32  }
 0x14c   :  { %v759_v55 = vpack.c.bf16 %v1894_v54, %v1894_v54  ;;  %v435_v60 = vshrl.u32 %v434_v58, 30 }
 0x14e   :  { %816 = vmatmul.bf16.vlgmr.msrb.gmra.mxu0 %v759_v55  ;;  %v436_v61 = vshll.u32 %v435_v60, 30  ;;  %v459_v35 = vsub.s32 4, %v435_v60 }
 0x150   :  { %v437_v62 = vsub.s32 %v433_v57, %v436_v61  ;;  %v460_v39 = vsel %vm337_vm4, %v459_v35, %v435_v60 }
 0x151   :  { %v462_v41 = vsel %vm1902_vm5, 0, %v460_v39 }
 0x152   :  { %v439_v3 = vsub.s32 0, %v437_v62  ;;  %vm438_vm2 = vcmp.lt.s32.totalorder %v437_v62, 0  ;;  %v633_v42 = vadd.s32 3, %v462_v41  ;;  %v479_v47 = vand.u32 3, %v462_v41 }
 0x154   :  { %v440_v63 = vsel %vm438_vm2, %v439_v3, %v437_v62  ;;  %v634_v45 = vand.u32 3, %v633_v42  ;;  %vm481_vm10 = vcmp.eq.s32.totalorder %v479_v47, 0  ;;  %vm484_vm11 = vcmp.eq.s32.totalorder %v479_v47, 2 }
 0x155   :  { %v441_v0 = vclz %v440_v63  ;;  %vm480_vm12 = vcmp.lt.s32.totalorder %v479_v47, 2 }
 0x156   :  { %vm636_vm7 = vcmp.eq.s32.totalorder %v634_v45, 0  ;;  %vm639_vm8 = vcmp.eq.s32.totalorder %v634_v45, 2  ;;  %vm635_vm9 = vcmp.lt.s32.totalorder %v634_v45, 2 }
 0x157   :  { %v1281_v1 = vadd.s32 4294967294, %v441_v0 }
 0x159   :  { %vm1282_vm3 = vcmp.lt.s32.totalorder %v1281_v1, 0 }
 0x15a   :  { %v444_v33 = vsel %vm1282_vm3, 0, %v1281_v1 }
 0x15b   :  { %v449_v5 = vsub.s32 4294967266, %v444_v33  ;;  %v445_v38 = vsub.s32 32, %v444_v33  ;;  %v446_v8 = vshll.u32 %v437_v62, %v444_v33 }
 0x15d   :  { %v450_v7 = vadd.s32 127, %v449_v5  ;;  %v447_v10 = vshrl.u32 %v429_v6, %v445_v38 }
 0x15f   :  { %v451_v11 = vshll.u32 %v450_v7, 23  ;;  %v448_v12 = vor.u32 %v447_v10, %v446_v8 }
 0x161   :  { %v452_v13 = vor.u32 4788187, %v451_v11  ;;  %v455_v15 = vcvt.s32.f32 %v448_v12 }
 0x163   :  { %v453_v14 = vand.u32 2147483647, %v452_v13 }
 0x165   :  { %v456_v16 = vmul.f32 %v455_v15, %v453_v14 }
 0x167   :  { %v457_v17 = vxor.u32 2147483648, %v456_v16 }
 0x169   :  { %v458_v19 = vsel %vm337_vm4, %v457_v17, %v456_v16 }
 0x16a   :  { %v461_v20 = vsel %vm1902_vm5, %v1812_v49, %v458_v19 }
 0x16b   :  { %v463_v21 = vmul.f32 %v461_v20, %v461_v20 }
 0x16d   :  { %v471_v28 = vmul.f32 -0.00019511016, %v463_v21  ;;  %v464_v29 = vmul.f32 -0.001358992, %v463_v21 }
 0x16f   :  { %v472_v30 = vadd.f32 0.008332121, %v471_v28  ;;  %v465_v31 = vadd.f32 0.041655596, %v464_v29 }
 0x171   :  { %v473_v32 = vmul.f32 %v472_v30, %v463_v21  ;;  %v466_v36 = vmul.f32 %v465_v31, %v463_v21 }
 0x173   :  { %v474_v37 = vadd.f32 -0.16666654, %v473_v32  ;;  %v467_v40 = vadd.f32 -0.4999988, %v466_v36 }
 0x175   :  { %v475_v4 = vmul.f32 %v474_v37, %v463_v21  ;;  %v468_v43 = vmul.f32 %v467_v40, %v463_v21 }
 0x177   :  { %v476_v44 = vadd.f32 1.0, %v475_v4  ;;  %v469_v59 = vadd.f32 1.0, %v468_v43  ;;  %v1047_v4 = vunpack.c.l.b16 %v1911_v26 }
 0x179   :  { %v477_v9 = vmul.f32 %v476_v44, %v461_v20  ;;  %v485_v50 = vxor.u32 2147483648, %v469_v59  ;;  %v1048_v41 = vpack.c.b16 %v1047_v4, %v1047_v4 }
 0x17b   :  { %v482_v48 = vxor.u32 2147483648, %v477_v9  ;;  %v641_v25 = vsel %vm639_vm8, %v485_v50, %v477_v9  ;;  %v486_v23 = vsel %vm484_vm11, %v485_v50, %v477_v9 }
 0x17d   :  { %v638_v51 = vsel %vm636_vm7, %v469_v59, %v482_v48  ;;  %v483_v34 = vsel %vm481_vm10, %v469_v59, %v482_v48 }
 0x17e   :  { %v642_v52 = vsel %vm635_vm9, %v638_v51, %v641_v25  ;;  %v487_v55 = vsel %vm480_vm12, %v483_v34, %v486_v23  ;;  %v1475_v25 = vld [vmem:[%s1977_s5 + $0x38] sm:$0xff]  ;;  %v1473_v34 = vld [vmem:[%s1977_s5 + $0x28] sm:$0xff]  ;;  %v1472_v23 = vld [vmem:[%s1977_s5 + $0x20] sm:$0xff] }
 0x17f   :  { %v643_v24 = vsel %vm478_vm13, nan, %v642_v52  ;;  %v488_v57 = vsel %vm478_vm13, nan, %v487_v55  ;;  %1152 = vmatpush.bf16.msra.mxu0 %v1475_v25  ;;  %v1474_v52 = vld [vmem:[%s1977_s5 + $0x30] sm:$0xff] }
 0x180   :  { %v648_v56 = vmul.f32 %v1493_v53, %v643_v24  ;;  %v649_v58 = vmul.f32 0.17677669, %v488_v57  ;;  %v937_v1 = vmul.f32 %v1880_v46, %v488_v57  ;;  %v1471_v53 = vld [vmem:[%s1977_s5 + $0x18] sm:$0xff]  ;;  %v1469_v57 = vld [vmem:[%s1977_s5 + $0x8] sm:$0xff] }
 0x182   :  { %v650_v60 = vmul.f32 0.17677669, %v648_v56  ;;  %v821_v3 = vmul.f32 %v1894_v54, %v649_v58  ;;  %v1468_v58 = vld [vmem:[%s1977_s5] sm:$0xff] }
 0x183   :  { %1153 = vmatpush.bf16.msra.mxu0 %v1474_v52 }
 0x187   :  { %1154 = vmatpush.bf16.msra.mxu0 %v1473_v34 }
 0x18b   :  { %1155 = vmatpush.bf16.msra.mxu0 %v1472_v23 }
 0x18f   :  { %1156 = vmatpush.bf16.msra.mxu0 %v1471_v53 }
 0x1cb   :  { %v817_v61 = vpop.f32.mrf.mxu0 }
 0x1cc   :  { %v933_v62 = vpop.f32.mrf.mxu2  ;;  %v822_v63 = vmul.f32 %v817_v61, %v650_v60 }
 0x1cd   :  { %v938_v0 = vmul.f32 %v933_v62, %v648_v56  ;;  %v1470_v56 = vld [vmem:[%s1977_s5 + $0x10] sm:$0xff] }
 0x1ce   :  { %v823_v33 = vadd.f32 %v822_v63, %v821_v3  ;;  %1157 = vmatpush.bf16.msra.mxu0 %v1470_v56 }
 0x1cf   :  { %v939_v49 = vadd.f32 %v938_v0, %v937_v1 }
 0x1d0   :  { %943 = vrot.lane.b32.xlu0 %v823_v33, %s1628_s1 }
 0x1d1   :  { %v941_v5 = vpack.c.bf16 %v939_v49, %v939_v49 }
 0x1d2   :  { %1158 = vmatpush.bf16.msra.mxu0 %v1469_v57 }
 0x1d3   :  { %1009 = vrot.lane.b32.xlu1 %v941_v5, %s1628_s1  ;;  %v952_v6 = vsel %vm947_vm14, %v941_v5, 0  ;;  %v819_v38 = vpop.f32.mrf.mxu0 }
 0x1d4   :  { %v935_v7 = vpop.f32.mrf.mxu2  ;;  %961 = vmatpush.bf16.xpose.msrb.mxu3 %v952_v6 }
 0x1d6   :  { %1159 = vmatpush.bf16.msra.mxu0 %v1468_v58 }
 0x242   :  { %v944_v8 = vpop.permute.xlu0 %943 }
 0x243   :  { %v946_v54 = vpack.c.bf16 %v944_v8, %v823_v33 }
 0x245   :  { %v1010_v10 = vpop.permute.xlu1 %1009  ;;  %1006 = vrot.lane.b32.xlu1 %v946_v54, %s1617_s29  ;;  %1384 = vmatmul.msk.bf16.vlgmr.msrb.gmra.mxu3 %vm947_vm14, %v946_v54 }
 0x246   :  { %v1015_v11 = vsel %vm947_vm14, %v1010_v10, 0 }
 0x247   :  { %1024 = vmatpush.bf16.xpose.msra.mxu2 %v1015_v11 }
 0x2b7   :  { %v1007_v46 = vpop.permute.xlu1 %1006 }
 0x2b8   :  { %1386 = vmatmul.msk.bf16.vlgmr.msra.gmra.mxu2 %vm947_vm14, %v1007_v46 }
 0x2c8   :  { %v963_v12 = vpop.f32.mrf.mxu3 }
 0x2c9   :  { %v968_v13 = vmul.f32 1.442695, %v963_v12 }
 0x2cb   :  { %1498 = vpow2.f32 %v968_v13 }
 0x2d0   :  { %v965_v14 = vpop.f32.mrf.mxu3 }
 0x2d1   :  { %v1499_v15 = vpop.eup %1498  ;;  %v970_v16 = vmul.f32 1.442695, %v965_v14 }
 0x2d2   :  { %v973_v17 = vsel %vm972_vm15, %v1499_v15, 0.0 }
 0x2d3   :  { %1500 = vpow2.f32 %v970_v16  ;;  %974 = vadd.xlane.f32.xlu0 %v973_v17 }
 0x2d9   :  { %v1501_v18 = vpop.eup %1500 }
 0x2da   :  { %v976_v19 = vsel %vm972_vm15, %v1501_v18, 0.0 }
 0x2db   :  { %977 = vadd.xlane.f32.xlu1 %v976_v19 }
 0x33b   :  { %v1026_v20 = vpop.f32.mrf.mxu2 }
 0x33c   :  { %v1031_v21 = vmul.f32 1.442695, %v1026_v20 }
 0x33e   :  { %1502 = vpow2.f32 %v1031_v21 }
 0x343   :  { %v1028_v22 = vpop.f32.mrf.mxu2 }
 0x344   :  { %v1503_v27 = vpop.eup %1502  ;;  %v1033_v28 = vmul.f32 1.442695, %v1028_v22 }
 0x345   :  { %v1035_v2 = vsel %vm972_vm15, %v1503_v27, 0.0 }
 0x346   :  { %1504 = vpow2.f32 %v1033_v28  ;;  %1036 = vadd.xlane.f32.xlu2 %v1035_v2  ;;  %v975_v29 = vpop.xlane.xlu0 %974 }
 0x347   :  { %1506 = vrcp.f32 %v975_v29 }
 0x34c   :  { %v1505_v30 = vpop.eup %1504 }
 0x34d   :  { %v1038_v31 = vsel %vm972_vm15, %v1505_v30, 0.0  ;;  %v1507_v35 = vpop.eup %1506 }
 0x34e   :  { %1039 = vadd.xlane.f32.xlu2 %v1038_v31  ;;  %v978_v32 = vpop.xlane.xlu1 %977  ;;  %v981_v37 = vmul.f32 %v1507_v35, %v1499_v15 }
 0x34f   :  { %1508 = vrcp.f32 %v978_v32 }
 0x355   :  { %v1509_v36 = vpop.eup %1508 }
 0x356   :  { %v982_v39 = vmul.f32 %v1509_v36, %v1501_v18 }
 0x358   :  { %v983_v40 = vpack.c.bf16 %v982_v39, %v981_v37 }
 0x35a   :  { %1385 = vmatmul.msk.bf16.vlgmr.msra.gmra.mxu1 %vm972_vm15, %v983_v40 }
 0x366   :  { %1049 = vrot.lane.b32.xlu2 %v1048_v41, %s1628_s1 }
 0x3b9   :  { %v1037_v42 = vpop.xlane.xlu2 %1036 }
 0x3ba   :  { %1510 = vrcp.f32 %v1037_v42 }
 0x3c0   :  { %v1511_v44 = vpop.eup %1510 }
 0x3c1   :  { %v1040_v43 = vpop.xlane.xlu2 %1039  ;;  %v1043_v59 = vmul.f32 %v1511_v44, %v1503_v27 }
 0x3c2   :  { %1512 = vrcp.f32 %v1040_v43 }
 0x3c8   :  { %v1513_v45 = vpop.eup %1512 }
 0x3c9   :  { %v1044_v9 = vmul.f32 %v1513_v45, %v1505_v30  ;;  %v1050_v47 = vpop.permute.xlu2 %1049 }
 0x3ca   :  { %v1055_v48 = vsel %vm987_vm6, %v1050_v47, 0 }
 0x3cb   :  { %v1045_v50 = vpack.c.bf16 %v1044_v9, %v1043_v59  ;;  %1064 = vmatpush.bf16.msra.mxu3 %v1055_v48 }
 0x3ce   :  { %1387 = vmatmul.msk.bf16.vlgmr.msra.gmra.mxu3 %vm972_vm15, %v1045_v50 }
 0x3d7   :  { %v1000_v51 = vpop.f32.mrf.mxu1 }
 0x3df   :  { %v1002_v26 = vpop.f32.mrf.mxu1 }
 0x3e0   :  { %1072 = vrot.lane.b32.xlu2 %v1002_v26, %s1629_s7 }
 0x43a   :  { %v1073_v60 = vpop.permute.xlu2 %1072 }
 0x43b   :  { %v1083_v62 = vsel %vm947_vm14, %v1000_v51, %v1073_v60 }
 0x451   :  { %v1066_v24 = vpop.f32.mrf.mxu3 }
 0x452   :  { %1076 = vrot.lane.b32.xlu2 %v1066_v24, %s1617_s29  ;;  %s1630_s29 = smov [#allocation8]  }
 0x453   :  { %s1171_s25 = sshll.u32 %s1630_s29, 4  ;;  %s1172_s25 = int_to_ptr.vmem [resolvable:$true] %s1171_s25 }
 0x459   :  { %v1068_v55 = vpop.f32.mrf.mxu3 }
 0x45a   :  { %1080 = vrot.lane.b32.xlu2 %v1068_v55, %s1628_s1 }
 0x4ac   :  { %v1077_v61 = vpop.permute.xlu2 %1076 }
 0x4ad   :  { %v1084_v3 = vsel %vm866_vm0, %v1083_v62, %v1077_v61 }
 0x4b4   :  { %v1081_v63 = vpop.permute.xlu2 %1080 }
 0x4b5   :  { %v1086_v0 = vsel %vm1085_vm1, %v1084_v3, %v1081_v63 }
 0x4b6   :  { %v1087_v1 = vpack.c.bf16 %v1086_v0, %v1086_v0 }
 0x4b8   :  { %1160 = vmatmul.bf16.vlgmr.msra.gmra.mxu0 %v1087_v1 }
 0x535   :  { %v1161_v33 = vpop.f32.mrf.mxu0 }
 0x536   :  { %1165 = vst [vmem:[#allocation8] sm:$0xff] %v1161_v33 }
 0x537   :  { %1176 = dma.vmem_to_hbm [thread:$0]  %s1172_s25, 128, %s1174_s28, [#allocation4]  }
 0x53d   :  { %v1163_v49 = vpop.f32.mrf.mxu0 }
 0x53e   :  { %1614 = dma.done.wait [#allocation4], 128  }
 0x53f   :  { %1615 = vsyncadd [#allocation4], 4294967168 }
 0x540   :  { %1181 = vsyncpa [#allocation3], 1 }
 0x541   :  { %1182 = vsyncpa [#allocation6], 1 }
 0x542   :  { %1183 = vsyncpa [#allocation4], 1 }

</bundles_post_ra>
